<compile_context>
chip_gen: v7x
topology: tpu7x:2x2x1
jax: 0.10.0
libtpu: 0.0.40
codegen_flags: <defaults>
</compile_context>

<pallas_src>
import jax
import jax.numpy as jnp
from jax.experimental import pallas as pl
from jax.experimental.pallas import tpu as pltpu


# ----------------------------------------------------------------------------
# Fused Pallas kernel: add-pooling + point-point graph conv (2 MXU matmuls)
# ----------------------------------------------------------------------------

def _convblock4_kernel(s_ref, x_ref, w_ref, b_ref, o_ref):
    # s_ref: [2*Nd, Ns]   bf16  rows 0..Nd-1 = A_pool, rows Nd.. = A_pp @ A_pool
    # x_ref: [Ns, B*Cin]  bf16  batch folded onto the lane axis (batch-major)
    # w_ref: [2*Cin, Cout] bf16 [W_root ; W_nbr] stacked on the contraction axis
    # b_ref: [1, Cout]    f32
    # o_ref: [B*Nd, Cout] f32   batch-major on sublanes
    nd = s_ref.shape[0] // 2
    cin = w_ref.shape[0] // 2
    nb = x_ref.shape[1] // cin           # batch size (static at trace time)

    # MXU matmul #1: pooling + neighbor aggregation for every batch at once.
    z = jnp.dot(s_ref[...], x_ref[...],
                preferred_element_type=jnp.float32)          # [2*Nd, B*Cin]
    pooled = z[:nd]                                          # [Nd, B*Cin]
    agg = z[nd:]                                             # [Nd, B*Cin]

    # Re-fold: batch -> sublanes, (root | neighbor) channels -> lanes.
    h = jnp.concatenate(
        [jnp.concatenate([pooled[:, bi * cin:(bi + 1) * cin],
                          agg[:, bi * cin:(bi + 1) * cin]], axis=-1)
         for bi in range(nb)],
        axis=0).astype(w_ref.dtype)                          # [B*Nd, 2*Cin]

    # MXU matmul #2: root + neighbor projections; bias + ReLU in f32.
    y = jnp.dot(h, w_ref[...], preferred_element_type=jnp.float32) + b_ref[...]
    o_ref[...] = jnp.maximum(y, 0.0)


def conv_block4(S, W_cat, bias, X):
    """Fused _ConvBlock4 forward: relu(pp_conv(pool_add(X)))."""
    B, Ns, Cin = X.shape
    Nd = S.shape[0] // 2
    Cout = W_cat.shape[1]

    # Fold batch onto the lane axis for the adjacency matmul (layout plumbing
    # in the wrapper, not in the kernel).
    X_f = jnp.transpose(X, (1, 0, 2)).reshape(Ns, B * Cin).astype(jnp.bfloat16)

    flops = 2 * (2 * Nd) * Ns * (B * Cin) + 2 * (B * Nd) * (2 * Cin) * Cout
    bytes_accessed = (2 * (S.size + X_f.size + W_cat.size)
                      + 4 * (bias.size + B * Nd * Cout))

    y = pl.pallas_call(
        _convblock4_kernel,
        out_shape=jax.ShapeDtypeStruct((B * Nd, Cout), jnp.float32),
        in_specs=[
            pl.BlockSpec(memory_space=pltpu.MemorySpace.VMEM),   # S (resident)
            pl.BlockSpec(memory_space=pltpu.MemorySpace.VMEM),   # X_f
            pl.BlockSpec(memory_space=pltpu.MemorySpace.VMEM),   # W_cat
            pl.BlockSpec(memory_space=pltpu.MemorySpace.VMEM),   # bias
        ],
        out_specs=pl.BlockSpec(memory_space=pltpu.MemorySpace.VMEM),
        cost_estimate=pl.CostEstimate(flops=flops, transcendentals=0,
                                      bytes_accessed=bytes_accessed),
    )(S, X_f, W_cat, bias)
    return y.reshape(B, Nd, Cout)


# ----------------------------------------------------------------------------
# Parameter / graph construction (glue, plain JAX)
# ----------------------------------------------------------------------------

def _linear_params(key, cin, cout):
    kw, kb = jax.random.split(key)
    W = jax.random.normal(kw, (cin, cout), jnp.float32) * (1.0 / jnp.sqrt(cin))
    b = jax.random.normal(kb, (1, cout), jnp.float32) * 0.01
    return W, b


def _dense_adj(key, n_dst, n_src, deg=3):
    """Dense adjacency A[dst, src] from a deterministic structured edge list
    with random positive edge_attr (add-aggregation of duplicates)."""
    dst = jnp.arange(n_dst)[:, None]
    src = (dst * deg + jnp.arange(deg)[None, :]) % n_src
    w = jax.random.uniform(key, (n_dst, deg), minval=0.1, maxval=1.0)
    A = jnp.zeros((n_dst, n_src), jnp.float32)
    A = A.at[jnp.broadcast_to(dst, src.shape), src].add(w)
    return A


def init_block(key, n_src, n_dst, cin, cout):
    k_pool, k_pp, k_wn, k_wr = jax.random.split(key, 4)
    Wn, b = _linear_params(k_wn, cin, cout)    # neighbor weight + bias
    Wr, _ = _linear_params(k_wr, cin, cout)    # root / self weight
    A_pool = _dense_adj(k_pool, n_dst, n_src, deg=2)    # pooling edges
    A_pp = _dense_adj(k_pp, n_dst, n_dst, deg=4)        # pointPoint edges

    # Static-graph precompute: fold A_pp into the pooling adjacency and stack
    # the two projection weights so the kernel needs exactly two MXU matmuls.
    S = jnp.concatenate([A_pool, A_pp @ A_pool], axis=0).astype(jnp.bfloat16)
    W_cat = jnp.concatenate([Wr, Wn], axis=0).astype(jnp.bfloat16)

    return {"S": S, "W_cat": W_cat, "b": b,
            "A_pool": A_pool, "A_pp": A_pp, "Wn": Wn, "Wr": Wr}


# ----------------------------------------------------------------------------
# _ConvBlock4 forward
# ----------------------------------------------------------------------------

@jax.jit
def conv_block4_forward(params, x):
    return conv_block4(params["S"], params["W_cat"], params["b"], x)


# ----------------------------------------------------------------------------

if __name__ == "__main__":
    key = jax.random.PRNGKey(0)
    k_block, k_x = jax.random.split(key)

    # Small shapes consistent with the module's place in the U-Net:
    # pool from 64 points down to 32, channels 16 -> 32, batch 2.
    B, N_SRC, N_DST, C_IN, C_OUT = 2, 64, 32, 16, 32

    params = init_block(k_block, N_SRC, N_DST, C_IN, C_OUT)
    x = jax.random.normal(k_x, (B, N_SRC, C_IN), jnp.float32)

    out = conv_block4_forward(params, x)
    out = jax.block_until_ready(out)
    assert out.shape == (B, N_DST, C_OUT), out.shape
    assert bool(jnp.all(jnp.isfinite(out)))

    # Reference check (plain JAX f32, same dense-adjacency semantics).
    # Tolerance loosened because the kernel's MXU operands are bfloat16.
    pooled = jnp.einsum("ds,bsc->bdc", params["A_pool"], x)
    agg = jnp.einsum("de,bec->bdc", params["A_pp"], pooled)
    ref = jnp.maximum(pooled @ params["Wr"] + agg @ params["Wn"]
                      + params["b"][None], 0.0)
    assert bool(jnp.allclose(out, ref, atol=5e-2, rtol=5e-2)), (
        float(jnp.max(jnp.abs(out - ref))))

    print("KERNEL_OK")
</pallas_src>

<mosaic_0001>
module attributes {stable_mosaic.version = 11 : i64} {
  func.func @_convblock4_kernel(%arg0: memref<64x64xbf16, #tpu.memory_space<vmem>>, %arg1: memref<64x32xbf16, #tpu.memory_space<vmem>>, %arg2: memref<32x32xbf16, #tpu.memory_space<vmem>>, %arg3: memref<1x32xf32, #tpu.memory_space<vmem>>, %arg4: memref<64x32xf32, #tpu.memory_space<vmem>>) attributes {dimension_semantics = [], scalar_prefetch = 0 : i64, scratch_operands = 0 : i64, tpu.core_type = #tpu.core_type<tc>} {
    %c0 = arith.constant 0 : index
    %c0_0 = arith.constant 0 : index
    %0 = vector.load %arg0[%c0, %c0_0] : memref<64x64xbf16, #tpu.memory_space<vmem>>, vector<64x64xbf16>
    %c0_1 = arith.constant 0 : index
    %c0_2 = arith.constant 0 : index
    %1 = vector.load %arg1[%c0_1, %c0_2] : memref<64x32xbf16, #tpu.memory_space<vmem>>, vector<64x32xbf16>
    %cst = arith.constant dense<0.000000e+00> : vector<64x32xf32>
    %2 = tpu.matmul %0, %1, %cst {dimension_numbers = #tpu.dot_dimension_numbers<[1], [0], [0], [1], [0, 0, 1, 1], [], []>} : vector<64x64xbf16>, vector<64x32xbf16>, vector<64x32xf32> -> vector<64x32xf32>
    %3 = vector.extract_strided_slice %2 {offsets = [0, 0], sizes = [32, 32], strides = [1, 1]} : vector<64x32xf32> to vector<32x32xf32>
    %4 = vector.extract_strided_slice %2 {offsets = [32, 0], sizes = [32, 32], strides = [1, 1]} : vector<64x32xf32> to vector<32x32xf32>
    %5 = vector.extract_strided_slice %3 {offsets = [0, 0], sizes = [32, 16], strides = [1, 1]} : vector<32x32xf32> to vector<32x16xf32>
    %6 = vector.extract_strided_slice %4 {offsets = [0, 0], sizes = [32, 16], strides = [1, 1]} : vector<32x32xf32> to vector<32x16xf32>
    %7 = tpu.concatenate %5, %6 in 1 : vector<32x16xf32>, vector<32x16xf32> -> vector<32x32xf32>
    %8 = vector.extract_strided_slice %3 {offsets = [0, 16], sizes = [32, 16], strides = [1, 1]} : vector<32x32xf32> to vector<32x16xf32>
    %9 = vector.extract_strided_slice %4 {offsets = [0, 16], sizes = [32, 16], strides = [1, 1]} : vector<32x32xf32> to vector<32x16xf32>
    %10 = tpu.concatenate %8, %9 in 1 : vector<32x16xf32>, vector<32x16xf32> -> vector<32x32xf32>
    %11 = tpu.concatenate %7, %10 in 0 : vector<32x32xf32>, vector<32x32xf32> -> vector<64x32xf32>
    %12 = arith.truncf %11 : vector<64x32xf32> to vector<64x32xbf16>
    %c0_3 = arith.constant 0 : index
    %c0_4 = arith.constant 0 : index
    %13 = vector.load %arg2[%c0_3, %c0_4] : memref<32x32xbf16, #tpu.memory_space<vmem>>, vector<32x32xbf16>
    %cst_5 = arith.constant dense<0.000000e+00> : vector<64x32xf32>
    %14 = tpu.matmul %12, %13, %cst_5 {dimension_numbers = #tpu.dot_dimension_numbers<[1], [0], [0], [1], [0, 0, 1, 1], [], []>} : vector<64x32xbf16>, vector<32x32xbf16>, vector<64x32xf32> -> vector<64x32xf32>
    %c0_6 = arith.constant 0 : index
    %c0_7 = arith.constant 0 : index
    %15 = vector.load %arg3[%c0_6, %c0_7] : memref<1x32xf32, #tpu.memory_space<vmem>>, vector<1x32xf32>
    %16 = vector.broadcast %15 : vector<1x32xf32> to vector<64x32xf32>
    %17 = arith.addf %14, %16 : vector<64x32xf32>
    %cst_8 = arith.constant 0.000000e+00 : f32
    %18 = vector.broadcast %cst_8 : f32 to vector<64x32xf32>
    %19 = arith.maximumf %17, %18 : vector<64x32xf32>
    %c0_9 = arith.constant 0 : index
    %c0_10 = arith.constant 0 : index
    %20 = vector.load %arg4[%c0_9, %c0_10] : memref<64x32xf32, #tpu.memory_space<vmem>>, vector<64x32xf32>
    tpu.vector_store %arg4[%c0_9, %c0_10], %19 {strides = array<i32>} : memref<64x32xf32, #tpu.memory_space<vmem>>, vector<64x32xf32>,
    return
  }
}

</mosaic_0001>

<bundles_post_ra>
// kernel: conv_block4_forward.1
= control target key start
LH: loop header
LB: loop body
LE: loop exit
PB: predicated region body
PF: predicated region fallthrough
CT: control target
= control target key end

     0   :  { %vm79_vm0 = vcmask 523264   ;;  %s554_s0 = inlined_call_operand.vmem [shape: bf16[64,64], index: 0, kind: input, shape index: {}]   ;;  %s555_s1 = inlined_call_operand.vmem [shape: bf16[64,32], index: 1, kind: input, shape index: {}]   ;;  %s556_s2 = inlined_call_operand.vmem [shape: bf16[32,32], index: 2, kind: input, shape index: {}]   ;;  %s557_s3 = inlined_call_operand.vmem [shape: f32[1,32], index: 3, kind: input, shape index: {}]   ;;  %s558_s4 = inlined_call_operand.hbm [shape: f32[64,32], index: 4, kind: output, shape index: {}]  }
   0x1   :  { %v421_v0 = vld [vmem:[%s555_s1] sm:$0xff]   ;;  %v422_v1 = vld [vmem:[%s555_s1 + $0x8] sm:$0xff]   ;;  %v423_v2 = vld [vmem:[%s555_s1 + $0x10] sm:$0xff]  }
   0x2   :  { %368 = vmatprep.subr.bf16.mxu0 %v421_v0  ;;  %v425_v3 = vld [vmem:[%s554_s0] sm:$0xff]   ;;  %v424_v4 = vld [vmem:[%s555_s1 + $0x18] sm:$0xff]  }
   0x3   :  { %369 = vmatpush3.bf16.msra.mxu0 %v421_v0  ;;  %376 = vmatprep.mubr.msk.bf16.mxu0 %vm79_vm0, %v425_v3 }
   0x4   :  { %370 = vmatprep.subr.bf16.mxu0 %v422_v1 }
   0x7   :  { %371 = vmatpush3.bf16.msra.mxu0 %v422_v1 }
   0x8   :  { %372 = vmatprep.subr.bf16.mxu0 %v423_v2 }
   0x9   :  { %9 = vsyncpa [#allocation3], 0  ;;  %v426_v5 = vld [vmem:[%s554_s0 + $0x8] sm:$0xff]   ;;  %v427_v6 = vld [vmem:[%s554_s0 + $0x10] sm:$0xff]   ;;  %s455_s8 = smov 112   ;;  %vm173_vm1 = vcmask 130048  }
   0xa   :  { %v428_v7 = vld [vmem:[%s554_s0 + $0x18] sm:$0xff]   ;;  %v429_v9 = vld [vmem:[%s556_s2] sm:$0xff]   ;;  %v430_v15 = vld [vmem:[%s556_s2 + $0x8] sm:$0xff]   ;;  %s456_s0 = smov 16   ;;  %vm225_vm2 = vcmask 261120  }
   0xb   :  { %373 = vmatpush3.bf16.msra.mxu0 %v423_v2  ;;  %384 = vmatprep.subr.bf16.mxu1 %v429_v9  ;;  %v347_v46 = vld [vmem:[%s557_s3] ss:$0 sm:$0xff]  ;;  %s457_s3 = smov [#allocation2]  }
   0xc   :  { %374 = vmatprep.subr.bf16.mxu0 %v424_v4  ;;  %385 = vmatpush3.bf16.msra.mxu1 %v429_v9  ;;  %s324_s10 = sshll.u32 %s457_s3, 4  ;;  %s325_s10 = int_to_ptr.vmem [resolvable:$true] %s324_s10 }
   0xd   :  { %386 = vmatprep.subr.bf16.mxu1 %v430_v15  ;;  %s431_s11 = scalar_lea.vmem %s325_s10, 1024  ;;  %p436_p1 = scmp.lt.s32.totalorder %s325_s10, %s325_s10 }
   0xe   :  { %p432_p0 = scmp.ne.s32.totalorder %s325_s10, %s431_s11  ;;  %p437_p2 = scmp.lt.s32.totalorder %s431_s11, %s431_s11 }
   0xf   :  { %375 = vmatpush3.bf16.msra.mxu0 %v424_v4 }
  0x10   :  { %387 = vmatpush3.bf16.msra.mxu1 %v430_v15  ;;  %p438_p3 = por %p437_p2, %p436_p1 }
  0x12   :  { %377 = vmatmul.mubr.msk.bf16.vlgmr.msra.gmra.mrb[0].mxu0 %vm79_vm0, %v426_v5  ;;  %p439_p4 = pnand %p438_p3, %p432_p0 }
  0x13   :  { %380 = vmatprep.mubr.msk.bf16.mxu0 %vm79_vm0, %v427_v6 }
  0x1a   :  { %381 = vmatmul.mubr.msk.bf16.gmra.mrb[4].mxu0 %vm79_vm0, %v428_v7 }
  0xe5   :  { %v378_v8 = vpop.f32.mrb[0].mxu0 }
  0xe6   :  { %v126_v10 = vpop.f32.mrb[1].mxu0 }
  0xe7   :  { %v379_v11 = vpop.f32.mrb[2].mxu0 }
  0xe8   :  { %v416_v12 = vpack.i.bf16 %v379_v11, %v378_v8  ;;  %v129_v13 = vpop.f32.mrb[3].mxu0 }
  0xe9   :  { %v411_v14 = vpack.i.bf16 %v129_v13, %v126_v10 }
  0xeb   :  { %412 = vrot.lane.b32.xlu1 %v411_v14, %s455_s8 }
  0xed   :  { %v382_v16 = vpop.f32.mrb[4].mxu0 }
  0xee   :  { %v142_v17 = vpop.f32.mrb[5].mxu0 }
  0xef   :  { %417 = vrot.lane.b32.xlu1 %v416_v12, %s455_s8  ;;  %v383_v18 = vpop.f32.mrb[6].mxu0 }
  0xf0   :  { %v406_v19 = vpack.i.bf16 %v383_v18, %v382_v16  ;;  %v145_v20 = vpop.f32.mrb[7].mxu0 }
  0xf1   :  { %v401_v21 = vpack.i.bf16 %v145_v20, %v142_v17 }
  0xf3   :  { %402 = vrot.lane.b32.xlu0 %v401_v21, %s456_s0 }
  0xf7   :  { %407 = vrot.lane.b32.xlu0 %v406_v19, %s456_s0 }
 0x15d   :  { %v413_v22 = vpop.permute.xlu1 %412 }
 0x15e   :  { %v415_v23 = vunpack.i.h.bf16 %v413_v22  ;;  %v414_v24 = vunpack.i.l.bf16 %v413_v22 }
 0x160   :  { %v194_v25 = vsel %vm173_vm1, %v414_v24, %v142_v17  ;;  %v195_v26 = vsel %vm173_vm1, %v415_v23, %v145_v20 }
 0x161   :  { %v200_v27 = vpack.c.bf16 %v195_v26, %v194_v25  ;;  %v418_v28 = vpop.permute.xlu1 %417 }
 0x162   :  { %v420_v29 = vunpack.i.h.bf16 %v418_v28  ;;  %v419_v30 = vunpack.i.l.bf16 %v418_v28 }
 0x164   :  { %v196_v31 = vsel %vm173_vm1, %v419_v30, %v382_v16  ;;  %v197_v32 = vsel %vm173_vm1, %v420_v29, %v383_v18 }
 0x165   :  { %v201_v33 = vpack.c.bf16 %v197_v32, %v196_v31  ;;  %v403_v34 = vpop.permute.xlu0 %402 }
 0x166   :  { %v405_v35 = vunpack.i.h.bf16 %v403_v34  ;;  %v404_v36 = vunpack.i.l.bf16 %v403_v34 }
 0x168   :  { %v174_v37 = vsel %vm173_vm1, %v126_v10, %v404_v36  ;;  %v175_v38 = vsel %vm173_vm1, %v129_v13, %v405_v35 }
 0x169   :  { %v408_v39 = vpop.permute.xlu0 %407  ;;  %v198_v40 = vpack.c.bf16 %v175_v38, %v174_v37 }
 0x16a   :  { %v410_v41 = vunpack.i.h.bf16 %v408_v39  ;;  %v409_v42 = vunpack.i.l.bf16 %v408_v39 }
 0x16b   :  { %388 = vmatprep.mubr.msk.bf16.mxu1 %vm225_vm2, %v198_v40 }
 0x16c   :  { %v177_v43 = vsel %vm173_vm1, %v379_v11, %v410_v41  ;;  %v176_v44 = vsel %vm173_vm1, %v378_v8, %v409_v42 }
 0x16d   :  { %v199_v45 = vpack.c.bf16 %v177_v43, %v176_v44 }
 0x16f   :  { %389 = vmatmul.mubr.msk.bf16.vlgmr.msra.gmra.mrb[0].mxu1 %vm225_vm2, %v199_v45 }
 0x170   :  { %392 = vmatprep.mubr.msk.bf16.mxu1 %vm225_vm2, %v200_v27 }
 0x177   :  { %393 = vmatmul.mubr.msk.bf16.gmra.mrb[4].mxu1 %vm225_vm2, %v201_v33 }
 0x242   :  { %v390_v47 = vpop.f32.mrb[0].mxu1 }
 0x243   :  { %v281_v48 = vadd.f32 %v390_v47, %v347_v46  ;;  %v272_v49 = vpop.f32.mrb[1].mxu1 }
 0x244   :  { %v273_v50 = vadd.f32 %v347_v46, %v272_v49  ;;  %v391_v51 = vpop.f32.mrb[2].mxu1 }
 0x245   :  { %v305_v52 = vmax.f32 %v281_v48, 0.0  ;;  %v284_v53 = vadd.f32 %v391_v51, %v347_v46  ;;  %v275_v54 = vpop.f32.mrb[3].mxu1 }
 0x246   :  { %v303_v55 = vmax.f32 %v273_v50, 0.0  ;;  %v276_v56 = vadd.f32 %v347_v46, %v275_v54 }
 0x247   :  { %313 = vst.msk [vmem:[#allocation2 + $0x10] sm:$0xff] %vm225_vm2, %v305_v52  ;;  %v306_v57 = vmax.f32 %v284_v53, 0.0 }
 0x248   :  { %311 = vst.msk [vmem:[#allocation2] sm:$0xff] %vm225_vm2, %v303_v55  ;;  %v304_v58 = vmax.f32 %v276_v56, 0.0 }
 0x249   :  { %314 = vst.msk [vmem:[#allocation2 + $0x18] sm:$0xff] %vm225_vm2, %v306_v57 }
 0x24a   :  { %312 = vst.msk [vmem:[#allocation2 + $0x8] sm:$0xff] %vm225_vm2, %v304_v58  ;;  %v394_v59 = vpop.f32.mrb[4].mxu1 }
 0x24b   :  { %v297_v60 = vadd.f32 %v394_v59, %v347_v46  ;;  %v288_v61 = vpop.f32.mrb[5].mxu1 }
 0x24c   :  { %v289_v62 = vadd.f32 %v347_v46, %v288_v61  ;;  %v395_v63 = vpop.f32.mrb[6].mxu1 }
 0x24d   :  { %v309_v0 = vmax.f32 %v297_v60, 0.0  ;;  %v300_v1 = vadd.f32 %v395_v63, %v347_v46  ;;  %v291_v2 = vpop.f32.mrb[7].mxu1 }
 0x24e   :  { %v307_v3 = vmax.f32 %v289_v62, 0.0  ;;  %v292_v4 = vadd.f32 %v347_v46, %v291_v2 }
 0x24f   :  { %317 = vst.msk [vmem:[#allocation2 + $0x30] sm:$0xff] %vm225_vm2, %v309_v0  ;;  %v310_v5 = vmax.f32 %v300_v1, 0.0 }
 0x250   :  { %315 = vst.msk [vmem:[#allocation2 + $0x20] sm:$0xff] %vm225_vm2, %v307_v3  ;;  %v308_v6 = vmax.f32 %v292_v4, 0.0 }
 0x251   :  { %318 = vst.msk [vmem:[#allocation2 + $0x38] sm:$0xff] %vm225_vm2, %v310_v5 }
 0x252   :  { %316 = vst.msk [vmem:[#allocation2 + $0x28] sm:$0xff] %vm225_vm2, %v308_v6 }
 0x253   :  { %442 = shalt.err (!%p439_p4)
}
 0x254   :  { %s443_s14 = scalar_lea.hbm %s558_s4, 1024 }
 0x255   :  { %p444_p5 = scmp.ne.s32.totalorder %s558_s4, %s443_s14  ;;  %p447_p6 = scmp.lt.u32.totalorder %s443_s14, %s558_s4 }
 0x257   :  { %p449_p7 = pnand %p447_p6, %p444_p5 }
 0x259   :  { %452 = shalt.err (!%p449_p7)
}
 0x25a   :  { %s458_s19 = smov 128   ;;  %s459_s20 = smov 8  }
 0x25b   :  { %330 = dma.vmem_to_hbm [thread:$0]  %s325_s10, 1024, %s558_s4, [#allocation3], %s458_s19, %s458_s19, %s459_s20  }
 0x25c   :  { %453 = dma.done.wait [#allocation3], 1024  }
 0x25d   :  { %454 = vsyncadd [#allocation3], 4294966272 }
 0x25e   :  { %334 = vsyncpa [#allocation3], 1 }

</bundles_post_ra>
